<compile_context>
chip_gen: v7x
topology: tpu7x:2x2x1
jax: 0.10.0
libtpu: 0.0.40
codegen_flags: <defaults>
</compile_context>

<pallas_src>
import math
import jax
import jax.numpy as jnp
from jax.experimental import pallas as pl
from jax.experimental.pallas import tpu as pltpu

_VMEM_LIMIT = 32 * 1024 * 1024   # explicit scoped-VMEM budget (safe on v5e/v6e/v7x)


# ----------------------------- in-kernel math helpers -----------------------------

def _silu(x):
    # EUP exp + approximate reciprocal: keeps the divide off the VPU critical path.
    return x * pl.reciprocal(1.0 + jnp.exp(-x), approx=True)


def _sigmoid_exact(x):
    # exact sigmoid for the squeeze-excite gate (correctness-review item).
    return 1.0 / (1.0 + jnp.exp(-x))


def _zero_map(ndim):
    return lambda n: (0,) * ndim


# ----------------------------- Pallas kernels -----------------------------

def matmul_bias_act(a, w, b, act="silu", out_dtype=jnp.bfloat16):
    """(M,K) @ (K,N) + b with optional SiLU.  bf16 MXU inputs, f32 accumulation,
    lane-dense N (multiple of 128).  M is tiled so the "parallel" grid has >=2
    steps (both v7x TensorCores used)."""
    M, K = a.shape
    N = w.shape[1]
    TM = max(8, min(256, ((M + 1) // 2 + 7) // 8 * 8))
    Mp = ((M + TM - 1) // TM) * TM
    if Mp != M:
        a = jnp.pad(a, ((0, Mp - M), (0, 0)))

    def kernel(a_ref, w_ref, b_ref, o_ref):
        acc = jnp.dot(a_ref[...], w_ref[...], preferred_element_type=jnp.float32)
        acc = acc + b_ref[...]
        if act == "silu":
            acc = _silu(acc)
        o_ref[...] = acc.astype(o_ref.dtype)

    out = pl.pallas_call(
        kernel,
        out_shape=jax.ShapeDtypeStruct((Mp, N), out_dtype),
        grid=(Mp // TM,),
        in_specs=[
            pl.BlockSpec((TM, K), lambda i: (i, 0)),
            pl.BlockSpec((K, N), lambda i: (0, 0)),
            pl.BlockSpec((1, N), lambda i: (0, 0)),
        ],
        out_specs=pl.BlockSpec((TM, N), lambda i: (i, 0)),
        compiler_params=pltpu.CompilerParams(
            dimension_semantics=("parallel",), vmem_limit_bytes=_VMEM_LIMIT),
    )(a, w, b)
    return out if Mp == M else out[:M]


def mbconv_block(x, p, *, stride):
    """One fused pallas_call per MBConv block (grid over batch, "parallel"):
    expand-1x1 (+BN+SiLU) -> depthwise-3x3 (+BN+SiLU) -> squeeze-excite ->
    project-1x1 (+BN) -> identity residual.  The expanded feature map is built
    directly inside a zero-padded VMEM scratch (no HBM round trip).

    stride==2: the wrapper slices the small bf16 INPUT into 4 spatial phases; the
    kernel expands each phase into 4 padded poly-phase scratch maps so every one
    of the 9 depthwise taps is a contiguous in-VMEM slice.
    """
    N, H, W, Cin = x.shape
    Cexp = p["exp_w"].shape[1]
    Cout = p["proj_w"].shape[1]
    OH = (H + 2 - 3) // stride + 1
    OW = (W + 2 - 3) // stride + 1
    has_skip = (stride == 1 and Cin == Cout)

    if stride == 1:
        acts = [x]
        act_specs = [pl.BlockSpec((1, H, W, Cin), lambda n: (n, 0, 0, 0))]
        scratch = pltpu.VMEM((H + 2, W + 2, Cexp), jnp.float32)
    else:
        # Tiny wrapper-side phase split of the INPUT (same total bytes as x); the
        # 2x-wider expanded map is produced and consumed entirely inside VMEM.
        acts = [x[:, de::2, ce::2, :] for de in range(2) for ce in range(2)]
        act_specs = [pl.BlockSpec((1, OH, OW, Cin), lambda n: (n, 0, 0, 0))
                     for _ in range(4)]
        scratch = pltpu.VMEM((4, OH + 1, OW + 1, Cexp), jnp.float32)

    consts = [p["exp_w"], p["exp_b"], p["dw_w"], p["dw_b"],
              p["se_w1"], p["se_b1"], p["se_w2"], p["se_b2"],
              p["proj_w"], p["proj_b"]]
    const_specs = [pl.BlockSpec(c.shape, _zero_map(c.ndim)) for c in consts]
    n_act = len(acts)

    def kernel(*refs):
        act_refs = refs[:n_act]
        (expw_ref, expb_ref, dww_ref, dwb_ref, sw1_ref, sb1_ref,
         sw2_ref, sb2_ref, pw_ref, pb_ref, o_ref, pad_ref) = refs[n_act:]

        pad_ref[...] = jnp.zeros_like(pad_ref)     # zero halo (cheap, per image)

        if stride == 1:
            xin = act_refs[0][0]                                   # (H, W, Cin) bf16
            e = jnp.dot(xin.reshape(H * W, Cin), expw_ref[...],
                        preferred_element_type=jnp.float32) + expb_ref[...]
            pad_ref[1:1 + H, 1:1 + W, :] = _silu(e).reshape(H, W, Cexp)

            def tap(i, j):
                return pad_ref[i:i + OH, j:j + OW, :]
        else:
            # expand each input phase and scatter into the 4 padded poly-phase
            # maps  Pph(pi,pj)[r,c] = P[2r+pi, 2c+pj]  (P = zero-padded expand).
            eph = []
            for de in range(2):
                for ce in range(2):
                    xin = act_refs[de * 2 + ce][0]                 # (OH, OW, Cin)
                    ev = jnp.dot(xin.reshape(OH * OW, Cin), expw_ref[...],
                                 preferred_element_type=jnp.float32) + expb_ref[...]
                    eph.append(_silu(ev).reshape(OH, OW, Cexp))
            pad_ref[3, 0:OH, 0:OW, :] = eph[0]          # Pph(1,1) <- e-phase(0,0)
            pad_ref[2, 0:OH, 1:OW + 1, :] = eph[1]      # Pph(1,0) <- e-phase(0,1)
            pad_ref[1, 1:OH + 1, 0:OW, :] = eph[2]      # Pph(0,1) <- e-phase(1,0)
            pad_ref[0, 1:OH + 1, 1:OW + 1, :] = eph[3]  # Pph(0,0) <- e-phase(1,1)

            def tap(i, j):
                return pad_ref[(i % 2) * 2 + (j % 2),
                               i // 2:i // 2 + OH, j // 2:j // 2 + OW, :]

        # depthwise 3x3 (BN scale pre-folded into dww; only shift left): VPU MACs.
        acc = None
        for i in range(3):
            for j in range(3):
                term = tap(i, j) * dww_ref[3 * i + j]
                acc = term if acc is None else acc + term
        y = _silu(acc + dwb_ref[...])
        h2 = y.reshape(OH * OW, Cexp)

        # squeeze-excite: pool + 2 tiny FCs + gate, all in VMEM.
        s = jnp.sum(h2, axis=0, keepdims=True) * (1.0 / (OH * OW))
        s = _silu(jnp.dot(s.astype(jnp.bfloat16), sw1_ref[...],
                          preferred_element_type=jnp.float32) + sb1_ref[...])
        g = _sigmoid_exact(jnp.dot(s.astype(jnp.bfloat16), sw2_ref[...],
                                   preferred_element_type=jnp.float32) + sb2_ref[...])
        gated = (h2 * g).astype(jnp.bfloat16)

        # project 1x1 (BN folded into weights/bias) + identity residual.
        out = jnp.dot(gated, pw_ref[...],
                      preferred_element_type=jnp.float32) + pb_ref[...]
        if has_skip:
            out = out + act_refs[0][0].reshape(OH * OW, Cout).astype(jnp.float32)
        o_ref[...] = out.astype(jnp.bfloat16).reshape(1, OH, OW, Cout)

    # TODO(synk): tile over OH row-bands (1-row halo) before scaling to real B5
    # resolutions so per-step VMEM stays inside v7x's 64 MiB and v5e gets >=8
    # pipeline steps; whole-image-per-batch blocking is fine at this toy size.
    return pl.pallas_call(
        kernel,
        out_shape=jax.ShapeDtypeStruct((N, OH, OW, Cout), jnp.bfloat16),
        grid=(N,),
        in_specs=act_specs + const_specs,
        out_specs=pl.BlockSpec((1, OH, OW, Cout), lambda n: (n, 0, 0, 0)),
        scratch_shapes=[scratch],
        compiler_params=pltpu.CompilerParams(
            dimension_semantics=("parallel",), vmem_limit_bytes=_VMEM_LIMIT),
    )(*(acts + consts))


def head_pool_fc(x, head_w, bn_sc, bn_sh, fc_w, fc_b):
    """Fused head: 1x1 _conv_head (raw output == the forward-hook `features`),
    BN + SiLU, global average pool and the final FC -- one pallas_call, grid over
    batch ("parallel").  Feature channels (256) keep the store lane-dense."""
    N, H, W, C = x.shape
    HW = H * W
    CH = head_w.shape[1]
    NC = fc_w.shape[1]

    def kernel(x_ref, hw_ref, sc_ref, sh_ref, fw_ref, fb_ref, raw_ref, log_ref):
        xv = x_ref[0].reshape(HW, C)                               # bf16
        raw = jnp.dot(xv, hw_ref[...], preferred_element_type=jnp.float32)
        raw_ref[...] = raw.reshape(1, HW, CH)                      # hook tensor (f32)
        y = _silu(raw * sc_ref[...] + sh_ref[...])
        pooled = jnp.sum(y, axis=0, keepdims=True) * (1.0 / HW)    # (1, CH)
        # TODO(synk): dropout(p=0.4) is identity in eval mode, omitted.
        logits = jnp.dot(pooled.astype(jnp.bfloat16), fw_ref[...],
                         preferred_element_type=jnp.float32) + fb_ref[...]
        log_ref[...] = logits.reshape(1, 1, NC)

    raw, logits = pl.pallas_call(
        kernel,
        out_shape=(jax.ShapeDtypeStruct((N, HW, CH), jnp.float32),
                   jax.ShapeDtypeStruct((N, 1, NC), jnp.float32)),
        grid=(N,),
        in_specs=[
            pl.BlockSpec((1, H, W, C), lambda n: (n, 0, 0, 0)),
            pl.BlockSpec((C, CH), lambda n: (0, 0)),
            pl.BlockSpec((1, CH), lambda n: (0, 0)),
            pl.BlockSpec((1, CH), lambda n: (0, 0)),
            pl.BlockSpec((CH, NC), lambda n: (0, 0)),
            pl.BlockSpec((1, NC), lambda n: (0, 0)),
        ],
        out_specs=(pl.BlockSpec((1, HW, CH), lambda n: (n, 0, 0)),
                   pl.BlockSpec((1, 1, NC), lambda n: (n, 0, 0))),
        compiler_params=pltpu.CompilerParams(
            dimension_semantics=("parallel",), vmem_limit_bytes=_VMEM_LIMIT),
    )(x, head_w, bn_sc, bn_sh, fc_w, fc_b)
    return raw.reshape(N, H, W, CH), logits.reshape(N, NC)


# ----------------------------- JAX glue (layout only) -----------------------------

def im2col(x, k, stride, pad):
    """Only used for the 3-channel stem conv (9x inflation of 3 channels is tiny)."""
    N, H, W, C = x.shape
    xp = jnp.pad(x, ((0, 0), (pad, pad), (pad, pad), (0, 0)))
    OH = (H + 2 * pad - k) // stride + 1
    OW = (W + 2 * pad - k) // stride + 1
    cols = [xp[:, i:i + stride * OH:stride, j:j + stride * OW:stride, :]
            for i in range(k) for j in range(k)]
    return jnp.concatenate(cols, axis=-1), OH, OW


# ----------------------------- parameter construction -----------------------------

def _winit(key, fan_in, shape):
    return jax.random.normal(key, shape, jnp.float32) * (1.0 / math.sqrt(fan_in))


def _bn_init(key, c, eps=1e-3):
    k1, k2, k3, k4 = jax.random.split(key, 4)
    gamma = 1.0 + 0.05 * jax.random.normal(k1, (c,), jnp.float32)
    beta = 0.05 * jax.random.normal(k2, (c,), jnp.float32)
    mean = 0.05 * jax.random.normal(k3, (c,), jnp.float32)
    var = 1.0 + 0.05 * jnp.abs(jax.random.normal(k4, (c,), jnp.float32))
    scale = gamma / jnp.sqrt(var + eps)
    shift = beta - mean * scale
    return scale, shift


def _fold_conv_bn(w, bn):
    """Fold eval-mode BatchNorm into a (K, N) conv/matmul weight once, at init."""
    scale, shift = bn
    return ((w * scale[None, :]).astype(jnp.bfloat16),
            shift.reshape(1, -1).astype(jnp.float32))


class EfficientNetB5Pallas:
    """Scaled-down EfficientNet-B5-style network with all compute in Pallas kernels.
    Channel widths are multiples of 128 so every kernel store is lane-dense and
    vreg lanes are fully used (review item)."""

    def __init__(self, num_classes=5, key=jax.random.PRNGKey(42)):
        keys = iter(jax.random.split(key, 64))
        nk = lambda: next(keys)
        C0, C1, C2, CH = 128, 128, 128, 256   # stem / block1 / block2 / head channels

        def mb_params(cin, cexp, cse, cout):
            exp_w, exp_b = _fold_conv_bn(_winit(nk(), cin, (cin, cexp)),
                                         _bn_init(nk(), cexp))
            dw_raw = _winit(nk(), 9, (9, cexp))
            dsc, dsh = _bn_init(nk(), cexp)
            dw_w = (dw_raw * dsc[None, :]).reshape(9, 1, 1, cexp).astype(jnp.float32)
            dw_b = dsh.reshape(1, 1, cexp).astype(jnp.float32)
            proj_w, proj_b = _fold_conv_bn(_winit(nk(), cexp, (cexp, cout)),
                                           _bn_init(nk(), cout))
            return dict(
                exp_w=exp_w, exp_b=exp_b, dw_w=dw_w, dw_b=dw_b,
                se_w1=_winit(nk(), cexp, (cexp, cse)).astype(jnp.bfloat16),
                se_b1=(0.01 * jax.random.normal(nk(), (cse,), jnp.float32)
                       ).reshape(1, cse),
                se_w2=_winit(nk(), cse, (cse, cexp)).astype(jnp.bfloat16),
                se_b2=(0.01 * jax.random.normal(nk(), (cexp,), jnp.float32)
                       ).reshape(1, cexp),
                proj_w=proj_w, proj_b=proj_b)

        stem_w, stem_b = _fold_conv_bn(_winit(nk(), 27, (27, C0)), _bn_init(nk(), C0))
        head_sc, head_sh = _bn_init(nk(), CH)
        self.params = dict(
            stem_w=stem_w, stem_b=stem_b,                 # 3x3 conv, 3 -> 128, stride 2
            block1=mb_params(C0, 2 * C0, 32, C1),         # stride 1, residual
            block2=mb_params(C1, 2 * C1, 32, C2),         # stride 2, no residual
            head_w=_winit(nk(), C2, (C2, CH)).astype(jnp.bfloat16),  # _conv_head, no BN fold (hook)
            head_sc=head_sc.reshape(1, CH).astype(jnp.float32),
            head_sh=head_sh.reshape(1, CH).astype(jnp.float32),
            fc_w=_winit(nk(), CH, (CH, num_classes)).astype(jnp.bfloat16),
            fc_b=jnp.zeros((1, num_classes), jnp.float32),
        )
        self.features = None   # analog of the _conv_head forward hook
        self.gradients = None  # TODO(synk): backward hook (grad_out) needs autodiff, not modeled here

    def __call__(self, x_nchw):
        p = self.params
        x = jnp.transpose(x_nchw, (0, 2, 3, 1)).astype(jnp.float32)  # NCHW -> NHWC
        N = x.shape[0]
        cols, OH, OW = im2col(x, 3, 2, 1)
        cols = cols.reshape(N * OH * OW, -1).astype(jnp.bfloat16)
        x = matmul_bias_act(cols, p["stem_w"], p["stem_b"], act="silu")
        x = x.reshape(N, OH, OW, -1)                       # (N, 16, 16, 128) bf16
        x = mbconv_block(x, p["block1"], stride=1)         # (N, 16, 16, 128) bf16
        x = mbconv_block(x, p["block2"], stride=2)         # (N,  8,  8, 128) bf16

        # fused head: _conv_head (raw = forward-hook features), _bn1 + swish,
        # _avg_pooling and _fc all inside one kernel.
        feats_nhwc, logits = head_pool_fc(x, p["head_w"], p["head_sc"],
                                          p["head_sh"], p["fc_w"], p["fc_b"])
        self.features = jnp.transpose(feats_nhwc, (0, 3, 1, 2))  # NCHW like the hook
        return logits


if __name__ == "__main__":
    key = jax.random.PRNGKey(0)
    x = jax.random.normal(key, (2, 3, 32, 32), jnp.float32)  # NCHW, like PyTorch
    model = EfficientNetB5Pallas(num_classes=5)
    logits = model(x)
    jax.block_until_ready(logits)
    assert logits.shape == (2, 5) and logits.dtype == jnp.float32
    assert model.features is not None and model.features.shape == (2, 256, 8, 8)
    print("KERNEL_OK")
</pallas_src>

<mosaic_0001>
module attributes {stable_mosaic.version = 11 : i64} {
  func.func @kernel(%arg0: i32, %arg1: memref<256x27xbf16, #tpu.memory_space<vmem>>, %arg2: memref<27x128xbf16, #tpu.memory_space<vmem>>, %arg3: memref<1x128xf32, #tpu.memory_space<vmem>>, %arg4: memref<256x128xbf16, #tpu.memory_space<vmem>>) attributes {dimension_semantics = [#tpu.dimension_semantics<parallel>], iteration_bounds = array<i64: 2>, scalar_prefetch = 0 : i64, scratch_operands = 0 : i64, tpu.core_type = #tpu.core_type<tc>, window_params = [{transform_indices = @transform_0, window_bounds = array<i64: 256, 27>}, {pipeline_mode = #tpu.pipeline_mode<synchronous>, transform_indices = @transform_1, window_bounds = array<i64: 27, 128>}, {pipeline_mode = #tpu.pipeline_mode<synchronous>, transform_indices = @transform_2, window_bounds = array<i64: 1, 128>}, {transform_indices = @transform_3, window_bounds = array<i64: 256, 128>}]} {
    %c0 = arith.constant 0 : index
    %c0_0 = arith.constant 0 : index
    %0 = vector.load %arg1[%c0, %c0_0] : memref<256x27xbf16, #tpu.memory_space<vmem>>, vector<256x27xbf16>
    %c0_1 = arith.constant 0 : index
    %c0_2 = arith.constant 0 : index
    %1 = vector.load %arg2[%c0_1, %c0_2] : memref<27x128xbf16, #tpu.memory_space<vmem>>, vector<27x128xbf16>
    %cst = arith.constant dense<0.000000e+00> : vector<256x128xf32>
    %2 = tpu.matmul %0, %1, %cst {dimension_numbers = #tpu.dot_dimension_numbers<[1], [0], [0], [1], [0, 0, 1, 1], [], []>} : vector<256x27xbf16>, vector<27x128xbf16>, vector<256x128xf32> -> vector<256x128xf32>
    %c0_3 = arith.constant 0 : index
    %c0_4 = arith.constant 0 : index
    %3 = vector.load %arg3[%c0_3, %c0_4] : memref<1x128xf32, #tpu.memory_space<vmem>>, vector<1x128xf32>
    %4 = vector.broadcast %3 : vector<1x128xf32> to vector<256x128xf32>
    %5 = arith.addf %2, %4 : vector<256x128xf32>
    %cst_5 = arith.constant 0.000000e+00 : f32
    %6 = vector.broadcast %cst_5 : f32 to vector<256x128xf32>
    %7 = arith.subf %6, %5 : vector<256x128xf32>
    %8 = math.exp %7 : vector<256x128xf32>
    %cst_6 = arith.constant 1.000000e+00 : f32
    %9 = vector.broadcast %cst_6 : f32 to vector<256x128xf32>
    %10 = arith.addf %9, %8 : vector<256x128xf32>
    %11 = tpu.reciprocal %10 {approx = true} : vector<256x128xf32> -> vector<256x128xf32>
    %12 = arith.mulf %5, %11 : vector<256x128xf32>
    %13 = arith.truncf %12 : vector<256x128xf32> to vector<256x128xbf16>
    %c0_7 = arith.constant 0 : index
    %c0_8 = arith.constant 0 : index
    %14 = vector.load %arg4[%c0_7, %c0_8] : memref<256x128xbf16, #tpu.memory_space<vmem>>, vector<256x128xbf16>
    tpu.vector_store %arg4[%c0_7, %c0_8], %13 {strides = array<i32>} : memref<256x128xbf16, #tpu.memory_space<vmem>>, vector<256x128xbf16>,
    return
  }
  func.func @transform_0(%arg0: i32) -> (i32, i32) {
    %c0_i32 = arith.constant 0 : i32
    %c0_i32_0 = arith.constant 0 : i32
    return %arg0, %c0_i32 : i32, i32
  }
  func.func @transform_1(%arg0: i32) -> (i32, i32) {
    %c0_i32 = arith.constant 0 : i32
    %c0_i32_0 = arith.constant 0 : i32
    %c0_i32_1 = arith.constant 0 : i32
    return %c0_i32, %c0_i32_0 : i32, i32
  }
  func.func @transform_2(%arg0: i32) -> (i32, i32) {
    %c0_i32 = arith.constant 0 : i32
    %c0_i32_0 = arith.constant 0 : i32
    %c0_i32_1 = arith.constant 0 : i32
    return %c0_i32, %c0_i32_0 : i32, i32
  }
  func.func @transform_3(%arg0: i32) -> (i32, i32) {
    %c0_i32 = arith.constant 0 : i32
    %c0_i32_0 = arith.constant 0 : i32
    return %arg0, %c0_i32 : i32, i32
  }
}

</mosaic_0001>

<bundles_post_ra>
// kernel: tpu_custom_call.1
= control target key start
LH: loop header
LB: loop body
LE: loop exit
PB: predicated region body
PF: predicated region fallthrough
CT: control target
= control target key end

     0   :  { %8 = vsyncpa [#allocation3], 0  ;;  %s1853_s0 = inlined_call_operand.vmem [shape: bf16[512,27], index: 0, kind: input, shape index: {}]   ;;  %s1854_s1 = inlined_call_operand.vmem [shape: bf16[27,128], index: 1, kind: input, shape index: {}]   ;;  %s1855_s2 = inlined_call_operand.vmem [shape: f32[1,128], index: 2, kind: input, shape index: {}]   ;;  %s1856_s3 = inlined_call_operand.hbm [shape: bf16[512,128], index: 3, kind: output, shape index: {}]  }
   0x1   :  { %10 = vsyncpa [#allocation3 + $0x1], 0  ;;  %s1493_s12 = smov 0   ;;  %s1495_s13 = smov 0  }
   0x2   :  { %s1497_s14 = smov 0   ;;  %s1499_s15 = smov 0  }
   0x3 LB: > { %s1514_s16 = sadd.s32 4294967295, %s1467_s15   ;;  %s952_s17 = sadd.s32 4294967294, %s1467_s15   ;;  %s1467_s15 = sphi %s1499_s15, %s1862_s15   ;;  %s1463_s14 = sphi %s1497_s14, %s1861_s14   ;;  %s1459_s13 = sphi %s1495_s13, %s1860_s13   ;;  %s1455_s12 = sphi %s1493_s12, %s1859_s12  }
   0x4   : > { %s1518_s18 = sadd.s32 1, %s1467_s15   ;;  %s91_s19 = sadd.s32 1, %s1463_s14 }
   0x5   : > { %s88_s20 = ssub.s32 %s1467_s15, %s1518_s18  ;;  %p101_p0 = scmp.ne.s32.totalorder %s1463_s14, %s1459_s13 }
   0x6   : > { %p89_p1 = scmp.eq.s32.totalorder %s88_s20, 0  ;;  %p102_p2 = scmp.eq.s32.totalorder %s1514_s16, 1 }
   0x7   : > { %p107_p3 = scmp.ne.s32.totalorder %s1459_s13, %s1455_s12  ;;  %p108_p4 = scmp.eq.s32.totalorder %s952_s17, 1 }
   0x8   : > { %s1529_s21 = scalar_select %p89_p1, %s1463_s14, %s91_s19  }
   0x9   : > { %p1531_p5 = por %p102_p2, %p101_p0  ;;  %p1535_p6 = por %p108_p4, %p107_p3 }
   0xa   : > { %p955_p7 = scmp.ge.s32.totalorder %s1467_s15, 1  ;;  %p141_p8 = scmp.lt.s32.totalorder %s1467_s15, 3 }
   0xc   : > { %p142_p9 = pnand %p955_p7, %p141_p8 }
   0xd   : > { %v1259_v0 = vld [vmem:[%s1854_s1] sm:$0xff] (!%p142_p9)   ;;  %vm356_vm0 = vcmask (!%p142_p9), 1044480   ;;  %v1260_v1 = vld [vmem:[%s1854_s1 + $0x8] sm:$0x3f] (!%p142_p9)   ;;  %vm357_vm1 = vcmask (!%p142_p9), 1045504   ;;  %s957_s28 = sshll.u32 (!%p142_p9), %s1514_s16, 5 }
   0xe   : > { %145 = sbr.rel (%p142_p9) target bundleno = 344 (0x158), region = 32  ;;  %1177 = vmatprep.subr.bf16.mxu0 (!%p142_p9), %v1259_v0  ;;  %1213 = vmatprep.subr.bf16.mxu1 (!%p142_p9), %v1259_v0  ;;  %v1469_v2 = vmov (!%p142_p9), 65535   ;;  %p166_p10 = scmp.lt.s32.totalorder (!%p142_p9), %s957_s28, 63  ;;  %vm307_vm2 = vcmask (!%p142_p9), 220160   ;;  %v1588_v22 = vld [vmem:[%s1855_s2] ss:$0 sm:$0xff] (!%p142_p9) }
   0xf   : > { %1178 = vmatpush3.bf16.msra.mxu0 (!%p142_p9), %v1259_v0  ;;  %1215 = vmatpush3.bf16.msra.mxu1 (!%p142_p9), %v1259_v0  ;;  %v358_v3 = vsel (!%p142_p9), %vm356_vm0, 4294967295, %v1469_v2  ;;  %s162_s8 = sand.u32 (!%p142_p9), 1, %s1459_s13   ;;  %s1063_s11 = sshll.u32 (!%p142_p9), %s1514_s16, 11 }
  0x10   : > { %v359_v4 = vsel (!%p142_p9), %vm357_vm1, %v358_v3, 0  ;;  %s1703_s9 = sshll.u32 (!%p142_p9), %s162_s8, 7  ;;  %s1803_s16 = scalar_lea.hbm (!%p142_p9), %s1856_s3, %s1063_s11 }
  0x11   : > { %v361_v5 = vand.u32 (!%p142_p9), %v1260_v1, %v359_v4  ;;  %s1722_s10 = scalar_lea.vmem (!%p142_p9), [#allocation2], %s1703_s9  ;;  %s1812_s24 = scalar_lea.sflag (!%p142_p9), [#allocation3], %s162_s8 }
  0x12   : > { %s890_s17 = sshll.u32 (!%p142_p9), %s1722_s10, 4  ;;  %s1470_s26 = smov (!%p142_p9), [#allocation2]   ;;  %s1805_s17 = int_to_ptr.vmem [resolvable:$true] %s890_s17 }
  0x13   : > { %1179 = vmatprep.subr.bf16.mxu0 (!%p142_p9), %v361_v5  ;;  %1214 = vmatprep.subr.bf16.mxu1 (!%p142_p9), %v361_v5  ;;  %s1405_s25 = scalar_lea.vmem (!%p142_p9), %s1805_s17, 2048  ;;  %s1409_s27 = sshll.u32 (!%p142_p9), %s1470_s26, 4  ;;  %s1410_s27 = int_to_ptr.vmem [resolvable:$false] %s1409_s27 }
  0x14   : > { %1180 = vmatpush3.bf16.msra.mxu0 (!%p142_p9), %v361_v5  ;;  %1216 = vmatpush3.bf16.msra.mxu1 (!%p142_p9), %v361_v5  ;;  %p1406_p11 = scmp.ne.s32.totalorder (!%p142_p9), %s1805_s17, %s1405_s25  ;;  %p1412_p0 = scmp.lt.s32.totalorder (!%p142_p9), %s1805_s17, %s1410_s27 }
  0x15   : > { %s1864_s28 = smov (!%p166_p10, %s957_s28), 63 }
  0x16   : > { %s958_s29 = sshll.u32 %s1864_s28, 2  ;;  %p1407_p12 = pnand %p1406_p11, %p1531_p5 }
  0x17   : > { %s1551_s5 = scalar_lea.vmem %s1853_s0, %s958_s29  ;;  %s1411_s28 = scalar_lea.vmem %s1410_s27, 4096 }
  0x18   : > { %v1261_v6 = vld [vmem:[%s1551_s5] sm:$0xff]   ;;  %v1263_v8 = vld [vmem:[%s1551_s5 + $0x8] sm:$0xff]   ;;  %v1265_v10 = vld [vmem:[%s1551_s5 + $0x10] sm:$0xff]   ;;  %p1408_p13 = pneg %p1407_p12  ;;  %p1413_p1 = scmp.lt.s32.totalorder %s1411_s28, %s1405_s25 }
  0x19   : > { %v1262_v7 = vld [vmem:[%s1551_s5 + $0x40] sm:$0xff]   ;;  %1181 = vmatprep.mubr.msk.bf16.mxu0 %vm307_vm2, %v1261_v6  ;;  %v1264_v9 = vld [vmem:[%s1551_s5 + $0x48] sm:$0xff]   ;;  %v1266_v11 = vld [vmem:[%s1551_s5 + $0x50] sm:$0xff]  }
  0x1a   : > { %1197 = vmatprep.mubr.msk.bf16.mxu1 %vm307_vm2, %v1262_v7  ;;  %1182 = vmatmul.mubr.msk.bf16.vlgmr.msra.gmra.mrb[0].mxu0 %vm307_vm2, %v1263_v8  ;;  %v1267_v12 = vld [vmem:[%s1551_s5 + $0x18] sm:$0xff]   ;;  %v1269_v14 = vld [vmem:[%s1551_s5 + $0x20] sm:$0xff]   ;;  %v1271_v16 = vld [vmem:[%s1551_s5 + $0x28] sm:$0xff]   ;;  %p1414_p2 = por %p1413_p1, %p1412_p0 }
  0x1b   : > { %1198 = vmatmul.mubr.msk.bf16.vlgmr.msra.gmra.mrb[0].mxu1 %vm307_vm2, %v1264_v9  ;;  %1185 = vmatprep.mubr.msk.bf16.mxu0 %vm307_vm2, %v1265_v10  ;;  %v1268_v13 = vld [vmem:[%s1551_s5 + $0x58] sm:$0xff]   ;;  %v1270_v15 = vld [vmem:[%s1551_s5 + $0x60] sm:$0xff]   ;;  %v1272_v17 = vld [vmem:[%s1551_s5 + $0x68] sm:$0xff]  }
  0x1c   : > { %1201 = vmatprep.mubr.msk.bf16.mxu1 %vm307_vm2, %v1266_v11  ;;  %v1273_v18 = vld [vmem:[%s1551_s5 + $0x30] sm:$0xff]   ;;  %v1275_v20 = vld [vmem:[%s1551_s5 + $0x38] sm:$0xff]   ;;  %p1415_p3 = pnand %p1414_p2, %p1408_p13 }
  0x1d   : > { %v1274_v19 = vld [vmem:[%s1551_s5 + $0x70] sm:$0xff]   ;;  %v1276_v21 = vld [vmem:[%s1551_s5 + $0x78] sm:$0xff]  }
  0x22   : > { %1186 = vmatmul.mubr.msk.bf16.gmra.mrb[4].mxu0 %vm307_vm2, %v1267_v12 }
  0x23   : > { %1202 = vmatmul.mubr.msk.bf16.gmra.mrb[4].mxu1 %vm307_vm2, %v1268_v13  ;;  %1189 = vmatprep.mubr.msk.bf16.mxu0 %vm307_vm2, %v1269_v14 }
  0x24   : > { %1205 = vmatprep.mubr.msk.bf16.mxu1 %vm307_vm2, %v1270_v15 }
  0x2a   : > { %1190 = vmatmul.mubr.msk.bf16.gmra.mrb[8].mxu0 %vm307_vm2, %v1271_v16 }
  0x2b   : > { %1206 = vmatmul.mubr.msk.bf16.gmra.mrb[8].mxu1 %vm307_vm2, %v1272_v17  ;;  %1193 = vmatprep.mubr.msk.bf16.mxu0 %vm307_vm2, %v1273_v18 }
  0x2c   : > { %1209 = vmatprep.mubr.msk.bf16.mxu1 %vm307_vm2, %v1274_v19 }
  0x32   : > { %1194 = vmatmul.mubr.msk.bf16.gmra.mrb[12].mxu0 %vm307_vm2, %v1275_v20 }
  0x33   : > { %1210 = vmatmul.mubr.msk.bf16.gmra.mrb[12].mxu1 %vm307_vm2, %v1276_v21 }
  0xed   : > { %v1183_v23 = vpop.f32.mrb[0].mxu0 }
  0xee   : > { %v1591_v24 = vadd.f32 %v1183_v23, %v1588_v22  ;;  %v1199_v25 = vpop.f32.mrb[0].mxu1  ;;  %v397_v26 = vpop.f32.mrb[1].mxu0 }
  0xef   : > { %v1594_v27 = vadd.f32 %v1199_v25, %v1588_v22  ;;  %v1597_v28 = vadd.f32 %v1588_v22, %v397_v26  ;;  %v461_v29 = vpop.f32.mrb[1].mxu1  ;;  %v1184_v30 = vpop.f32.mrb[2].mxu0 }
  0xf0   : > { %v526_v31 = vsub.f32 0.0, %v1591_v24  ;;  %v1601_v32 = vadd.f32 %v1588_v22, %v461_v29  ;;  %v1604_v33 = vadd.f32 %v1184_v30, %v1588_v22  ;;  %v1200_v34 = vpop.f32.mrb[2].mxu1  ;;  %v400_v35 = vpop.f32.mrb[3].mxu0 }
  0xf1   : > { %v542_v36 = vsub.f32 0.0, %v1594_v27  ;;  %v524_v37 = vsub.f32 0.0, %v1597_v28  ;;  %v1609_v38 = vadd.f32 %v1200_v34, %v1588_v22  ;;  %v1612_v39 = vadd.f32 %v1588_v22, %v400_v35  ;;  %v464_v40 = vpop.f32.mrb[3].mxu1 }
  0xf2   : > { %v560_v41 = vmul.f32 1.442695, %v526_v31  ;;  %v540_v42 = vsub.f32 0.0, %v1601_v32  ;;  %v527_v43 = vsub.f32 0.0, %v1604_v33  ;;  %v1617_v44 = vadd.f32 %v1588_v22, %v464_v40 }
  0xf3   : > { %v592_v45 = vmul.f32 1.442695, %v542_v36  ;;  %v556_v46 = vmul.f32 1.442695, %v524_v37  ;;  %v543_v47 = vsub.f32 0.0, %v1609_v38  ;;  %v525_v48 = vsub.f32 0.0, %v1612_v39 }
  0xf4   : > { %1277 = vpow2.f32 %v560_v41  ;;  %v588_v49 = vmul.f32 1.442695, %v540_v42  ;;  %v562_v50 = vmul.f32 1.442695, %v527_v43  ;;  %v541_v51 = vsub.f32 0.0, %v1617_v44 }
  0xf5   : > { %1279 = vpow2.f32 %v592_v45  ;;  %v594_v52 = vmul.f32 1.442695, %v543_v47  ;;  %v1187_v53 = vpop.f32.mrb[4].mxu0  ;;  %v558_v54 = vmul.f32 1.442695, %v525_v48 }
  0xf6   : > { %1281 = vpow2.f32 %v556_v46  ;;  %v1623_v55 = vadd.f32 %v1187_v53, %v1588_v22  ;;  %v1203_v56 = vpop.f32.mrb[4].mxu1  ;;  %v413_v57 = vpop.f32.mrb[5].mxu0  ;;  %v590_v58 = vmul.f32 1.442695, %v541_v51 }
  0xf7   : > { %1283 = vpow2.f32 %v588_v49  ;;  %v1626_v59 = vadd.f32 %v1203_v56, %v1588_v22  ;;  %v1629_v60 = vadd.f32 %v1588_v22, %v413_v57  ;;  %v477_v61 = vpop.f32.mrb[5].mxu1  ;;  %v1188_v62 = vpop.f32.mrb[6].mxu0 }
  0xf8   : > { %1285 = vpow2.f32 %v562_v50  ;;  %v530_v63 = vsub.f32 0.0, %v1623_v55  ;;  %v1633_v0 = vadd.f32 %v1588_v22, %v477_v61  ;;  %v1636_v1 = vadd.f32 %v1188_v62, %v1588_v22  ;;  %v1204_v2 = vpop.f32.mrb[6].mxu1  ;;  %v416_v3 = vpop.f32.mrb[7].mxu0 }
  0xf9   : > { %1287 = vpow2.f32 %v594_v52  ;;  %v546_v4 = vsub.f32 0.0, %v1626_v59  ;;  %v528_v5 = vsub.f32 0.0, %v1629_v60  ;;  %v480_v6 = vpop.f32.mrb[7].mxu1  ;;  %v1643_v12 = vadd.f32 %v1204_v2, %v1588_v22 }
  0xfa   : > { %1289 = vpow2.f32 %v558_v54  ;;  %v568_v7 = vmul.f32 1.442695, %v530_v63  ;;  %v544_v8 = vsub.f32 0.0, %v1633_v0  ;;  %v531_v9 = vsub.f32 0.0, %v1636_v1 }
  0xfb   : > { %1291 = vpow2.f32 %v590_v58  ;;  %v600_v10 = vmul.f32 1.442695, %v546_v4  ;;  %v564_v11 = vmul.f32 1.442695, %v528_v5  ;;  %v547_v21 = vsub.f32 0.0, %v1643_v12 }
  0xfc   : > { %1293 = vpow2.f32 %v568_v7  ;;  %v596_v13 = vmul.f32 1.442695, %v544_v8  ;;  %v570_v14 = vmul.f32 1.442695, %v531_v9  ;;  %v1647_v23 = vadd.f32 %v1588_v22, %v416_v3 }
  0xfd   : > { %1295 = vpow2.f32 %v600_v10  ;;  %v1191_v15 = vpop.f32.mrb[8].mxu0  ;;  %v1650_v31 = vadd.f32 %v1588_v22, %v480_v6  ;;  %v602_v46 = vmul.f32 1.442695, %v547_v21 }
  0xfe   : > { %v1278_v16 = vpop.eup %1277  ;;  %1297 = vpow2.f32 %v564_v11  ;;  %v1207_v17 = vpop.f32.mrb[8].mxu1  ;;  %v529_v47 = vsub.f32 0.0, %v1647_v23  ;;  %v1655_v51 = vadd.f32 %v1191_v15, %v1588_v22 }
  0xff   : > { %v429_v18 = vpop.f32.mrb[9].mxu0  ;;  %v1280_v19 = vpop.eup %1279  ;;  %v622_v20 = vadd.f32 1.0, %v1278_v16  ;;  %1299 = vpow2.f32 %v596_v13  ;;  %v545_v50 = vsub.f32 0.0, %v1650_v31  ;;  %v1658_v54 = vadd.f32 %v1207_v17, %v1588_v22 }
 0x100   : > { %v493_v25 = vpop.f32.mrb[9].mxu1  ;;  %v1192_v26 = vpop.f32.mrb[10].mxu0  ;;  %v638_v30 = vadd.f32 1.0, %v1280_v19  ;;  %1301 = vpow2.f32 %v570_v14  ;;  %v1661_v56 = vadd.f32 %v1588_v22, %v429_v18  ;;  %v566_v6 = vmul.f32 1.442695, %v529_v47 }
 0x101   : > { %v1282_v29 = vpop.eup %1281  ;;  %v1208_v34 = vpop.f32.mrb[10].mxu1  ;;  %1303 = vrcp.f32 %v622_v20  ;;  %v1664_v62 = vadd.f32 %v1588_v22, %v493_v25  ;;  %v1667_v63 = vadd.f32 %v1192_v26, %v1588_v22  ;;  %v534_v13 = vsub.f32 0.0, %v1655_v51 }
 0x102   : > { %v432_v35 = vpop.f32.mrb[11].mxu0  ;;  %v1284_v36 = vpop.eup %1283  ;;  %v620_v37 = vadd.f32 1.0, %v1282_v29  ;;  %1305 = vrcp.f32 %v638_v30  ;;  %v1672_v7 = vadd.f32 %v1208_v34, %v1588_v22  ;;  %v550_v19 = vsub.f32 0.0, %v1658_v54 }
 0x103   : > { %v496_v40 = vpop.f32.mrb[11].mxu1  ;;  %v1286_v41 = vpop.eup %1285  ;;  %v636_v42 = vadd.f32 1.0, %v1284_v36  ;;  %v1680_v14 = vadd.f32 %v1588_v22, %v432_v35  ;;  %v532_v20 = vsub.f32 0.0, %v1661_v56  ;;  %v548_v29 = vsub.f32 0.0, %v1664_v62 }
 0x104   : > { %v1288_v43 = vpop.eup %1287  ;;  %1307 = vrcp.f32 %v620_v37  ;;  %v623_v45 = vadd.f32 1.0, %v1286_v41  ;;  %v535_v30 = vsub.f32 0.0, %v1667_v63  ;;  %v551_v36 = vsub.f32 0.0, %v1672_v7 }
 0x105   : > { %v1290_v48 = vpop.eup %1289  ;;  %1309 = vrcp.f32 %v636_v42  ;;  %v639_v49 = vadd.f32 1.0, %v1288_v43  ;;  %v1195_v57 = vpop.f32.mrb[12].mxu0  ;;  %v1695_v37 = vadd.f32 %v1588_v22, %v496_v40  ;;  %v598_v42 = vmul.f32 1.442695, %v545_v50 }
 0x106   : > { %v1292_v52 = vpop.eup %1291  ;;  %1311 = vrcp.f32 %v623_v45  ;;  %v621_v53 = vadd.f32 1.0, %v1290_v48  ;;  %v1211_v2 = vpop.f32.mrb[12].mxu1  ;;  %v533_v43 = vsub.f32 0.0, %v1680_v14  ;;  %v1699_v45 = vadd.f32 %v1195_v57, %v1588_v22 }
 0x107   : > { %v1294_v58 = vpop.eup %1293  ;;  %1313 = vrcp.f32 %v639_v49  ;;  %v637_v61 = vadd.f32 1.0, %v1292_v52  ;;  %v1669_v3 = vpop.f32.mrb[13].mxu0  ;;  %v576_v48 = vmul.f32 1.442695, %v534_v13  ;;  %v608_v49 = vmul.f32 1.442695, %v550_v19 }
 0x108   : > { %v1296_v4 = vpop.eup %1295  ;;  %1315 = vrcp.f32 %v621_v53  ;;  %v626_v5 = vadd.f32 1.0, %v1294_v58  ;;  %v1674_v8 = vpop.f32.mrb[13].mxu1  ;;  %v1706_v52 = vadd.f32 %v1211_v2, %v1588_v22  ;;  %v572_v53 = vmul.f32 1.442695, %v532_v20 }
 0x109   : > { %v1676_v9 = vpop.f32.mrb[14].mxu0  ;;  %v1298_v10 = vpop.eup %1297  ;;  %1317 = vrcp.f32 %v637_v61  ;;  %v642_v11 = vadd.f32 1.0, %v1296_v4  ;;  %v604_v58 = vmul.f32 1.442695, %v548_v29  ;;  %v578_v50 = vmul.f32 1.442695, %v535_v30 }
 0x10a   : > { %v1682_v15 = vpop.f32.mrb[14].mxu1  ;;  %v1684_v16 = vpop.f32.mrb[15].mxu0  ;;  %1319 = vrcp.f32 %v626_v5  ;;  %v624_v18 = vadd.f32 1.0, %v1298_v10  ;;  %v610_v57 = vmul.f32 1.442695, %v551_v36  ;;  %v549_v5 = vsub.f32 0.0, %v1695_v37 }
 0x10b   : > { %v1300_v17 = vpop.eup %1299  ;;  %v1688_v21 = vpop.f32.mrb[15].mxu1  ;;  %1321 = vrcp.f32 %v642_v11  ;;  %v574_v13 = vmul.f32 1.442695, %v533_v43  ;;  %v538_v2 = vsub.f32 0.0, %v1699_v45 }
 0x10c   : > { %v1302_v25 = vpop.eup %1301  ;;  %v640_v26 = vadd.f32 1.0, %v1300_v17  ;;  %1323 = vrcp.f32 %v624_v18 }
 0x10d   : > { %v1304_v34 = vpop.eup %1303  ;;  %v627_v35 = vadd.f32 1.0, %v1302_v25 }
 0x10e   : > { %v1306_v41 = vpop.eup %1305  ;;  %1325 = vrcp.f32 %v640_v26  ;;  %v686_v4 = vmul.f32 %v1304_v34, %v1591_v24  ;;  %v554_v24 = vsub.f32 0.0, %v1706_v52  ;;  %v584_v34 = vmul.f32 1.442695, %v538_v2 }
 0x10f   : > { %v1308_v47 = vpop.eup %1307  ;;  %1327 = vrcp.f32 %v627_v35 }
 0x110   : > { %v1310_v40 = vpop.eup %1309  ;;  %1329 = vpow2.f32 %v602_v46  ;;  %v702_v46 = vmul.f32 %v1306_v41, %v1594_v27  ;;  %v684_v19 = vmul.f32 %v1308_v47, %v1597_v28  ;;  %v616_v35 = vmul.f32 1.442695, %v554_v24 }
 0x111   : > { %v1312_v61 = vpop.eup %1311  ;;  %1331 = vpow2.f32 %v566_v6  ;;  %v700_v26 = vmul.f32 %v1310_v40, %v1601_v32  ;;  %v1754_v24 = vadd.f32 %v1588_v22, %v1684_v16 }
 0x112   : > { %v1314_v10 = vpop.eup %1313  ;;  %v687_v11 = vmul.f32 %v1312_v61, %v1604_v33  ;;  %1333 = vpow2.f32 %v598_v42 }
 0x113   : > { %v1316_v17 = vpop.eup %1315  ;;  %v703_v18 = vmul.f32 %v1314_v10, %v1609_v38  ;;  %1335 = vpow2.f32 %v576_v48  ;;  %v606_v38 = vmul.f32 1.442695, %v549_v5  ;;  %v1741_v5 = vadd.f32 %v1588_v22, %v1674_v8 }
 0x114   : > { %v1318_v6 = vpop.eup %1317  ;;  %v1072_v20 = vpack.c.bf16 %v687_v11, %v686_v4  ;;  %v685_v25 = vmul.f32 %v1316_v17, %v1612_v39  ;;  %1337 = vpow2.f32 %v608_v49 }
 0x115   : > { %v1320_v33 = vpop.eup %1319  ;;  %v1112_v29 = vpack.c.bf16 %v703_v18, %v702_v46  ;;  %v701_v30 = vmul.f32 %v1318_v6, %v1617_v44  ;;  %1339 = vpow2.f32 %v572_v53 }
 0x116   : > { %v1719_v27 = vpop.eup %1321  ;;  %1144 = vst [vmem:[%s1722_s10 + $0x8] sm:$0xff] %v1072_v20   ;;  %v1067_v28 = vpack.c.bf16 %v685_v25, %v684_v19  ;;  %1341 = vpow2.f32 %v604_v58  ;;  %v690_v42 = vmul.f32 %v1320_v33, %v1623_v55  ;;  %v1737_v55 = vadd.f32 %v1588_v22, %v1669_v3 }
 0x117   : > { %v1725_v39 = vpop.eup %1323  ;;  %1152 = vst [vmem:[%s1722_s10 + $0x48] sm:$0xff] %v1112_v29   ;;  %v1107_v32 = vpack.c.bf16 %v701_v30, %v700_v26  ;;  %1343 = vpow2.f32 %v578_v50  ;;  %v1749_v3 = vadd.f32 %v1682_v15, %v1588_v22  ;;  %v552_v19 = vsub.f32 0.0, %v1741_v5 }
 0x118   : > { %v1728_v44 = vpop.eup %1325  ;;  %1068 = vst [vmem:[%s1722_s10] sm:$0xff] %v1067_v28   ;;  %1345 = vpow2.f32 %v610_v57  ;;  %v536_v8 = vsub.f32 0.0, %v1737_v55  ;;  %v1759_v20 = vadd.f32 %v1588_v22, %v1688_v21 }
 0x119   : > { %v1328_v36 = vpop.eup %1327  ;;  %1151 = vst [vmem:[%s1722_s10 + $0x40] sm:$0xff] %v1107_v32   ;;  %1347 = vpow2.f32 %v574_v13  ;;  %v1745_v13 = vadd.f32 %v1676_v9, %v1588_v22  ;;  %v555_v16 = vsub.f32 0.0, %v1749_v3 }
 0x11a   : > { %v1330_v41 = vpop.eup %1329  ;;  %v691_v43 = vmul.f32 %v1328_v36, %v1636_v1  ;;  %1349 = vpow2.f32 %v606_v38  ;;  %v580_v28 = vmul.f32 1.442695, %v536_v8  ;;  %v537_v38 = vsub.f32 0.0, %v1754_v24 }
 0x11b   : > { %v1332_v47 = vpop.eup %1331  ;;  %v643_v48 = vadd.f32 1.0, %v1330_v41  ;;  %1351 = vpow2.f32 %v584_v34  ;;  %v539_v33 = vsub.f32 0.0, %v1745_v13  ;;  %v612_v34 = vmul.f32 1.442695, %v552_v19 }
 0x11c   : > { %v1334_v49 = vpop.eup %1333  ;;  %v1082_v40 = vpack.c.bf16 %v691_v43, %v690_v42  ;;  %v625_v53 = vadd.f32 1.0, %v1332_v47  ;;  %1353 = vpow2.f32 %v616_v35  ;;  %v553_v22 = vsub.f32 0.0, %v1759_v20 }
 0x11d   : > { %v1336_v58 = vpop.eup %1335  ;;  %1355 = vrcp.f32 %v643_v48  ;;  %v641_v50 = vadd.f32 1.0, %v1334_v49  ;;  %v706_v35 = vmul.f32 %v1719_v27, %v1626_v59  ;;  %v586_v41 = vmul.f32 1.442695, %v539_v33 }
 0x11e   : > { %v1338_v61 = vpop.eup %1337  ;;  %1146 = vst [vmem:[%s1722_s10 + $0x18] sm:$0xff] %v1082_v40   ;;  %1357 = vrcp.f32 %v625_v53  ;;  %v630_v4 = vadd.f32 1.0, %v1336_v58  ;;  %v688_v43 = vmul.f32 %v1725_v39, %v1629_v60  ;;  %v704_v47 = vmul.f32 %v1728_v44, %v1633_v0 }
 0x11f   : > { %v1340_v1 = vpop.eup %1339  ;;  %1359 = vrcp.f32 %v641_v50  ;;  %v646_v57 = vadd.f32 1.0, %v1338_v61  ;;  %v618_v49 = vmul.f32 1.442695, %v555_v16  ;;  %v614_v50 = vmul.f32 1.442695, %v553_v22 }
 0x120   : > { %v1342_v10 = vpop.eup %1341  ;;  %1361 = vrcp.f32 %v630_v4  ;;  %v628_v11 = vadd.f32 1.0, %v1340_v1 }
 0x121   : > { %v1344_v2 = vpop.eup %1343  ;;  %1363 = vrcp.f32 %v646_v57  ;;  %v644_v17 = vadd.f32 1.0, %v1342_v10 }
 0x122   : > { %v1346_v46 = vpop.eup %1345  ;;  %1365 = vrcp.f32 %v628_v11  ;;  %v631_v18 = vadd.f32 1.0, %v1344_v2 }
 0x123   : > { %v1348_v6 = vpop.eup %1347  ;;  %1367 = vrcp.f32 %v644_v17  ;;  %v647_v9 = vadd.f32 1.0, %v1346_v46 }
 0x124   : > { %v1350_v15 = vpop.eup %1349  ;;  %1369 = vrcp.f32 %v631_v18  ;;  %v629_v25 = vadd.f32 1.0, %v1348_v6 }
 0x125   : > { %v1352_v26 = vpop.eup %1351  ;;  %1371 = vrcp.f32 %v647_v9  ;;  %v645_v29 = vadd.f32 1.0, %v1350_v15 }
 0x126   : > { %v1354_v30 = vpop.eup %1353  ;;  %1373 = vrcp.f32 %v629_v25  ;;  %v634_v46 = vadd.f32 1.0, %v1352_v26 }
 0x127   : > { %v1356_v32 = vpop.eup %1355  ;;  %1375 = vrcp.f32 %v645_v29  ;;  %v650_v8 = vadd.f32 1.0, %v1354_v30 }
 0x128   : > { %v1358_v21 = vpop.eup %1357  ;;  %v707_v36 = vmul.f32 %v1356_v32, %v1643_v12  ;;  %1377 = vpow2.f32 %v580_v28  ;;  %v582_v12 = vmul.f32 1.442695, %v537_v38 }
 0x129   : > { %v1360_v42 = vpop.eup %1359  ;;  %v689_v48 = vmul.f32 %v1358_v21, %v1647_v23  ;;  %1379 = vpow2.f32 %v612_v34 }
 0x12a   : > { %v1362_v40 = vpop.eup %1361  ;;  %v1122_v53 = vpack.c.bf16 %v707_v36, %v706_v35  ;;  %v705_v59 = vmul.f32 %v1360_v42, %v1650_v31  ;;  %1381 = vpow2.f32 %v586_v41 }
 0x12b   : > { %v1364_v27 = vpop.eup %1363  ;;  %v1077_v58 = vpack.c.bf16 %v689_v48, %v688_v43  ;;  %1383 = vpow2.f32 %v618_v49  ;;  %v694_v31 = vmul.f32 %v1362_v40, %v1655_v51 }
 0x12c   : > { %v1366_v61 = vpop.eup %1365  ;;  %1154 = vst [vmem:[%s1722_s10 + $0x58] sm:$0xff] %v1122_v53   ;;  %v1117_v60 = vpack.c.bf16 %v705_v59, %v704_v47  ;;  %1385 = vpow2.f32 %v582_v12  ;;  %v710_v1 = vmul.f32 %v1364_v27, %v1658_v54 }
 0x12d   : > { %v1368_v0 = vpop.eup %1367  ;;  %1145 = vst [vmem:[%s1722_s10 + $0x10] sm:$0xff] %v1077_v58   ;;  %1387 = vpow2.f32 %v614_v50  ;;  %v692_v11 = vmul.f32 %v1366_v61, %v1661_v56 }
 0x12e   : > { %v1370_v23 = vpop.eup %1369  ;;  %1153 = vst [vmem:[%s1722_s10 + $0x50] sm:$0xff] %v1117_v60   ;;  %v708_v51 = vmul.f32 %v1368_v0, %v1664_v62  ;;  %1389 = vrcp.f32 %v634_v46 }
 0x12f   : > { %v1372_v39 = vpop.eup %1371  ;;  %v695_v44 = vmul.f32 %v1370_v23, %v1667_v63  ;;  %1391 = vrcp.f32 %v650_v8 }
 0x130   : > { %v1374_v4 = vpop.eup %1373  ;;  %v711_v57 = vmul.f32 %v1372_v39, %v1672_v7 }
 0x131   : > { %v1376_v10 = vpop.eup %1375  ;;  %v1092_v2 = vpack.c.bf16 %v695_v44, %v694_v31  ;;  %v693_v17 = vmul.f32 %v1374_v4, %v1680_v14 }
 0x132   : > { %v1132_v18 = vpack.c.bf16 %v711_v57, %v710_v1  ;;  %v709_v63 = vmul.f32 %v1376_v10, %v1695_v37  ;;  %v1378_v54 = vpop.eup %1377 }
 0x133   : > { %1148 = vst [vmem:[%s1722_s10 + $0x28] sm:$0xff] %v1092_v2   ;;  %v1087_v6 = vpack.c.bf16 %v693_v17, %v692_v11  ;;  %v1380_v9 = vpop.eup %1379  ;;  %v632_v56 = vadd.f32 1.0, %v1378_v54 }
 0x134   : > { %1156 = vst [vmem:[%s1722_s10 + $0x68] sm:$0xff] %v1132_v18   ;;  %v1127_v7 = vpack.c.bf16 %v709_v63, %v708_v51  ;;  %v1382_v19 = vpop.eup %1381  ;;  %v648_v14 = vadd.f32 1.0, %v1380_v9 }
 0x135   : > { %1147 = vst [vmem:[%s1722_s10 + $0x20] sm:$0xff] %v1087_v6   ;;  %v1384_v15 = vpop.eup %1383  ;;  %1393 = vrcp.f32 %v632_v56  ;;  %v635_v62 = vadd.f32 1.0, %v1382_v19 }
 0x136   : > { %1155 = vst [vmem:[%s1722_s10 + $0x60] sm:$0xff] %v1127_v7   ;;  %v1386_v25 = vpop.eup %1385  ;;  %1395 = vrcp.f32 %v648_v14  ;;  %v651_v37 = vadd.f32 1.0, %v1384_v15 }
 0x137   : > { %v1388_v33 = vpop.eup %1387  ;;  %1397 = vrcp.f32 %v635_v62  ;;  %v633_v26 = vadd.f32 1.0, %v1386_v25 }
 0x138   : > { %1399 = vrcp.f32 %v651_v37  ;;  %v649_v29 = vadd.f32 1.0, %v1388_v33  ;;  %v1390_v16 = vpop.eup %1389 }
 0x139   : > { %1401 = vrcp.f32 %v633_v26  ;;  %v1392_v30 = vpop.eup %1391  ;;  %v698_v22 = vmul.f32 %v1390_v16, %v1699_v45 }
 0x13a   : > { %1403 = vrcp.f32 %v649_v29  ;;  %v714_v36 = vmul.f32 %v1392_v30, %v1706_v52 }
 0x13f   : > { %v1394_v28 = vpop.eup %1393 }
 0x140   : > { %v1396_v38 = vpop.eup %1395  ;;  %v696_v43 = vmul.f32 %v1394_v28, %v1737_v55 }
 0x141   : > { %v1398_v32 = vpop.eup %1397 }
 0x142   : > { %v1400_v34 = vpop.eup %1399  ;;  %v699_v21 = vmul.f32 %v1398_v32, %v1745_v13  ;;  %v712_v13 = vmul.f32 %v1396_v38, %v1741_v5 }
 0x143   : > { %v1402_v35 = vpop.eup %1401  ;;  %v715_v41 = vmul.f32 %v1400_v34, %v1749_v3 }
 0x144   : > { %v1404_v42 = vpop.eup %1403  ;;  %v1102_v47 = vpack.c.bf16 %v699_v21, %v698_v22  ;;  %v697_v45 = vmul.f32 %v1402_v35, %v1754_v24 }
 0x145   : > { %v1142_v48 = vpack.c.bf16 %v715_v41, %v714_v36  ;;  %v713_v49 = vmul.f32 %v1404_v42, %v1759_v20 }
 0x146   : > { %1150 = vst [vmem:[%s1722_s10 + $0x38] sm:$0xff] %v1102_v47   ;;  %v1097_v52 = vpack.c.bf16 %v697_v45, %v696_v43 }
 0x147   : > { %1158 = vst [vmem:[%s1722_s10 + $0x78] sm:$0xff] %v1142_v48   ;;  %v1137_v55 = vpack.c.bf16 %v713_v49, %v712_v13 }
 0x148   : > { %1149 = vst [vmem:[%s1722_s10 + $0x30] sm:$0xff] %v1097_v52  }
 0x149   : > { %1157 = vst [vmem:[%s1722_s10 + $0x70] sm:$0xff] %v1137_v55  }
 0x14a   : > { %1418 = shalt.err (!%p1415_p3)
}
 0x14b   : > { %s1419_s29 = scalar_lea.hbm %s1803_s16, 2048  ;;  %s1423_s5 = scalar_lea.hbm %s1856_s3, 4096 }
 0x14c   : > { %p1420_p4 = scmp.ne.s32.totalorder %s1803_s16, %s1419_s29  ;;  %p1424_p9 = scmp.lt.u32.totalorder %s1803_s16, %s1856_s3 }
 0x14d   : > { %p1425_p10 = scmp.lt.u32.totalorder %s1423_s5, %s1419_s29  ;;  %p1427_p12 = scmp.lt.u32.totalorder %s1419_s29, %s1803_s16 }
 0x14e   : > { %p1421_p7 = pnand %p1420_p4, %p1531_p5 }
 0x14f   : > { %p1426_p11 = por %p1425_p10, %p1424_p9 }
 0x150   : > { %p1422_p8 = pneg %p1421_p7 }
 0x151   : > { %p1428_p13 = por %p1427_p12, %p1426_p11 }
 0x153   : > { %p1429_p0 = pnand %p1428_p13, %p1422_p8 }
 0x155   : > { %1432 = shalt.err (!%p1429_p0)
}
 0x156   : > { %s1471_s8 = smov 64   ;;  %s1472_s9 = smov 4  }
 0x157   : > { %1217 = dma.vmem_to_hbm [thread:$0]  (%p1531_p5), %s1805_s17, 2048, %s1803_s16, %s1812_s24, %s1471_s8, %s1471_s8, %s1472_s9  }
 0x158 PF: > { %p1223_p1 = scmp.ge.s32.totalorder %s1467_s15, 2  ;;  %s905_s10 = sand.u32 1, %s1455_s12  }
 0x159   : > { %s906_s11 = scalar_lea.sflag [#allocation3], %s905_s10 }
 0x15a   : > { %p1220_p2 = pnand %p1223_p1, %p1535_p6 }
 0x15c   : > { %1450 = dma.done.wait (!%p1220_p2), %s906_s11, 2048  }
 0x15d   : > { %1452 = vsyncadd (!%p1220_p2), %s906_s11, 4294965248  ;;  %p13_p3 = scmp.ge.s32.totalorder %s1518_s18, 4   ;;  %s1859_s12 = smov %s1459_s13 }
 0x15e   : > { %s1860_s13 = smov %s1463_s14  ;;  %s1861_s14 = smov %s1529_s21 }
 0x15f   : > { %s1862_s15 = smov %s1518_s18  ;;  %15 = sbr.rel (!%p13_p3) target bundleno = 3 (0x3), region = 67 }
 0x166   :  { %911 = vsyncpa [#allocation3], 1 }
 0x167   :  { %913 = vsyncpa [#allocation3 + $0x1], 1 }

</bundles_post_ra>
